<compile_context>
chip_gen: v5e
topology: v5e:2x2
jax: 0.10.0
libtpu: 0.0.40
codegen_flags: <defaults>
</compile_context>

<pallas_src>
import functools

import jax
import jax.numpy as jnp
from jax.experimental import pallas as pl
from jax.experimental.pallas import tpu as pltpu


def _round_up(x: int, m: int) -> int:
    return ((x + m - 1) // m) * m


def ffnn_kernel(x_ref, w1_ref, b1_ref, w2_ref, b2_ref, o_ref):
    # hidden = ReLU(x @ W1.T + b1)
    x = x_ref[...]
    h = jnp.dot(x, w1_ref[...], preferred_element_type=jnp.float32) + b1_ref[...]
    h = jnp.maximum(h, 0.0)
    # logits = hidden @ W2.T + b2    -> [TB, 5]
    logits = jnp.dot(h, w2_ref[...], preferred_element_type=jnp.float32) + b2_ref[...]
    # Numerically stable log_softmax over the 5 real classes (no padded lanes,
    # so no masking tricks are needed).
    m = jnp.max(logits, axis=-1, keepdims=True)
    shifted = logits - m
    lse = jnp.log(jnp.sum(jnp.exp(shifted), axis=-1, keepdims=True))
    o_ref[...] = (shifted - lse).astype(o_ref.dtype)


def _choose_tile(B: int, tb: int) -> int:
    """Batch tile: full batch for small B; otherwise a multiple of 128, capped
    by `tb`, and sized so there are at least 2 grid steps (v7x megacore)."""
    if B < 256:
        return B  # single step; block dims equal the full array dims
    half = -(-B // 2)  # cdiv(B, 2)
    tile = min(tb, _round_up(half, 128))
    return max(tile, 128)


@functools.partial(jax.jit, static_argnames=("tb",))
def ffnn_forward(x, w1_t, b1, w2_t, b2, *, tb: int = 4096):
    """x: [B, D], w1_t: [D, H], b1: [1, H], w2_t: [H, O], b2: [1, O] -> [B, O]."""
    B, D = x.shape
    H = w1_t.shape[1]
    O = w2_t.shape[1]

    TB = _choose_tile(B, tb)
    grid = (pl.cdiv(B, TB),)

    flops = 2 * B * (D * H + H * O)
    transcendentals = B * (O + 1)  # exp per logit + log per row
    bytes_accessed = 4 * (B * D + D * H + H + H * O + O + B * O)

    out = pl.pallas_call(
        ffnn_kernel,
        out_shape=jax.ShapeDtypeStruct((B, O), jnp.float32),
        grid_spec=pltpu.PrefetchScalarGridSpec(
            num_scalar_prefetch=0,
            grid=grid,
            in_specs=[
                pl.BlockSpec((TB, D), lambda i: (i, 0)),   # x tile: streams over batch
                pl.BlockSpec((D, H), lambda i: (0, 0)),    # W1.T: VMEM-resident
                pl.BlockSpec((1, H), lambda i: (0, 0)),    # b1:   VMEM-resident
                pl.BlockSpec((H, O), lambda i: (0, 0)),    # W2.T: VMEM-resident
                pl.BlockSpec((1, O), lambda i: (0, 0)),    # b2:   VMEM-resident
            ],
            out_specs=pl.BlockSpec((TB, O), lambda i: (i, 0)),
        ),
        compiler_params=pltpu.CompilerParams(
            dimension_semantics=("parallel",),
            vmem_limit_bytes=32 * 1024 * 1024,  # safe on v5e/v6e/v7x; usage ~1-2 MiB
        ),
        cost_estimate=pl.CostEstimate(
            flops=flops,
            transcendentals=transcendentals,
            bytes_accessed=bytes_accessed,
        ),
    )(x, w1_t, b1, w2_t, b2)

    return out


def ffnn_reference(x, w1_t, b1, w2_t, b2):
    h = jnp.maximum(x @ w1_t + b1, 0.0)
    logits = h @ w2_t + b2
    return jax.nn.log_softmax(logits, axis=-1)


# TODO(synk): compute_Loss / nn.NLLLoss is training-only and not part of the
# forward pass; not implemented as a kernel.

if __name__ == "__main__":
    # Small shapes consistent with the module: input_dim=32, h=32, output_dim=5.
    D, H, O = 32, 32, 5

    key = jax.random.PRNGKey(0)
    kx, kw1, kb1, kw2, kb2, kx2 = jax.random.split(key, 6)

    # Deterministic PyTorch-style Linear init (uniform +/- 1/sqrt(fan_in)).
    bound1 = 1.0 / (D ** 0.5)
    bound2 = 1.0 / (H ** 0.5)
    w1_t = jax.random.uniform(kw1, (D, H), jnp.float32, -bound1, bound1)  # W1.T
    b1 = jax.random.uniform(kb1, (1, H), jnp.float32, -bound1, bound1)
    w2_t = jax.random.uniform(kw2, (H, O), jnp.float32, -bound2, bound2)  # W2.T
    b2 = jax.random.uniform(kb2, (1, O), jnp.float32, -bound2, bound2)

    # Check 1: tiny batch (single grid step, full-array blocks).
    B = 8
    x = jax.random.normal(kx, (B, D), jnp.float32)
    out = jax.block_until_ready(ffnn_forward(x, w1_t, b1, w2_t, b2))
    ref = ffnn_reference(x, w1_t, b1, w2_t, b2)
    assert out.shape == (B, O)
    assert jnp.allclose(out, ref, atol=1e-5, rtol=1e-5)

    # Check 2: batch not a multiple of the tile -> exercises the multi-step
    # grid with a ragged (clipped) last block and resident weights.
    B2 = 300
    x2 = jax.random.normal(kx2, (B2, D), jnp.float32)
    out2 = jax.block_until_ready(ffnn_forward(x2, w1_t, b1, w2_t, b2, tb=128))
    ref2 = ffnn_reference(x2, w1_t, b1, w2_t, b2)
    assert out2.shape == (B2, O)
    assert jnp.allclose(out2, ref2, atol=1e-5, rtol=1e-5)

    print("KERNEL_OK")
</pallas_src>

<mosaic_0001>
module attributes {stable_mosaic.version = 11 : i64} {
  func.func @ffnn_kernel(%arg0: i32, %arg1: memref<8x32xf32, #tpu.memory_space<vmem>>, %arg2: memref<32x32xf32, #tpu.memory_space<vmem>>, %arg3: memref<1x32xf32, #tpu.memory_space<vmem>>, %arg4: memref<32x5xf32, #tpu.memory_space<vmem>>, %arg5: memref<1x5xf32, #tpu.memory_space<vmem>>, %arg6: memref<8x5xf32, #tpu.memory_space<vmem>>) attributes {dimension_semantics = [#tpu.dimension_semantics<parallel>], iteration_bounds = array<i64: 1>, scalar_prefetch = 0 : i64, scratch_operands = 0 : i64, tpu.core_type = #tpu.core_type<tc>, window_params = [{transform_indices = @transform_0, window_bounds = array<i64: 8, 32>}, {pipeline_mode = #tpu.pipeline_mode<synchronous>, transform_indices = @transform_1, window_bounds = array<i64: 32, 32>}, {pipeline_mode = #tpu.pipeline_mode<synchronous>, transform_indices = @transform_2, window_bounds = array<i64: 1, 32>}, {pipeline_mode = #tpu.pipeline_mode<synchronous>, transform_indices = @transform_3, window_bounds = array<i64: 32, 5>}, {pipeline_mode = #tpu.pipeline_mode<synchronous>, transform_indices = @transform_4, window_bounds = array<i64: 1, 5>}, {transform_indices = @transform_5, window_bounds = array<i64: 8, 5>}]} {
    %c0 = arith.constant 0 : index
    %c0_0 = arith.constant 0 : index
    %0 = vector.load %arg1[%c0, %c0_0] : memref<8x32xf32, #tpu.memory_space<vmem>>, vector<8x32xf32>
    %c0_1 = arith.constant 0 : index
    %c0_2 = arith.constant 0 : index
    %1 = vector.load %arg2[%c0_1, %c0_2] : memref<32x32xf32, #tpu.memory_space<vmem>>, vector<32x32xf32>
    %cst = arith.constant dense<0.000000e+00> : vector<8x32xf32>
    %2 = tpu.matmul %0, %1, %cst {dimension_numbers = #tpu.dot_dimension_numbers<[1], [0], [0], [1], [0, 0, 1, 1], [], []>} : vector<8x32xf32>, vector<32x32xf32>, vector<8x32xf32> -> vector<8x32xf32>
    %c0_3 = arith.constant 0 : index
    %c0_4 = arith.constant 0 : index
    %3 = vector.load %arg3[%c0_3, %c0_4] : memref<1x32xf32, #tpu.memory_space<vmem>>, vector<1x32xf32>
    %4 = vector.broadcast %3 : vector<1x32xf32> to vector<8x32xf32>
    %5 = arith.addf %2, %4 : vector<8x32xf32>
    %cst_5 = arith.constant 0.000000e+00 : f32
    %6 = vector.broadcast %cst_5 : f32 to vector<8x32xf32>
    %7 = arith.maximumf %5, %6 : vector<8x32xf32>
    %c0_6 = arith.constant 0 : index
    %c0_7 = arith.constant 0 : index
    %8 = vector.load %arg4[%c0_6, %c0_7] : memref<32x5xf32, #tpu.memory_space<vmem>>, vector<32x5xf32>
    %cst_8 = arith.constant dense<0.000000e+00> : vector<8x5xf32>
    %9 = tpu.matmul %7, %8, %cst_8 {dimension_numbers = #tpu.dot_dimension_numbers<[1], [0], [0], [1], [0, 0, 1, 1], [], []>} : vector<8x32xf32>, vector<32x5xf32>, vector<8x5xf32> -> vector<8x5xf32>
    %c0_9 = arith.constant 0 : index
    %c0_10 = arith.constant 0 : index
    %10 = vector.load %arg5[%c0_9, %c0_10] : memref<1x5xf32, #tpu.memory_space<vmem>>, vector<1x5xf32>
    %11 = vector.broadcast %10 : vector<1x5xf32> to vector<8x5xf32>
    %12 = arith.addf %9, %11 : vector<8x5xf32>
    %cst_11 = arith.constant dense<0xFF800000> : vector<8xf32>
    %13 = vector.multi_reduction <maximumf>, %12, %cst_11 [1] : vector<8x5xf32> to vector<8xf32>
    %14 = vector.shape_cast %13 : vector<8xf32> to vector<8x1xf32>
    %15 = vector.broadcast %14 : vector<8x1xf32> to vector<8x5xf32>
    %16 = arith.subf %12, %15 : vector<8x5xf32>
    %17 = math.exp %16 : vector<8x5xf32>
    %cst_12 = arith.constant dense<0.000000e+00> : vector<8xf32>
    %18 = vector.multi_reduction <add>, %17, %cst_12 [1] : vector<8x5xf32> to vector<8xf32>
    %19 = vector.shape_cast %18 : vector<8xf32> to vector<8x1xf32>
    %20 = math.log %19 : vector<8x1xf32>
    %21 = vector.broadcast %20 : vector<8x1xf32> to vector<8x5xf32>
    %22 = arith.subf %16, %21 : vector<8x5xf32>
    %c0_13 = arith.constant 0 : index
    %c0_14 = arith.constant 0 : index
    %23 = vector.load %arg6[%c0_13, %c0_14] : memref<8x5xf32, #tpu.memory_space<vmem>>, vector<8x5xf32>
    tpu.vector_store %arg6[%c0_13, %c0_14], %22 {strides = array<i32>} : memref<8x5xf32, #tpu.memory_space<vmem>>, vector<8x5xf32>,
    return
  }
  func.func @transform_0(%arg0: i32) -> (i32, i32) {
    %c0_i32 = arith.constant 0 : i32
    %c0_i32_0 = arith.constant 0 : i32
    return %arg0, %c0_i32 : i32, i32
  }
  func.func @transform_1(%arg0: i32) -> (i32, i32) {
    %c0_i32 = arith.constant 0 : i32
    %c0_i32_0 = arith.constant 0 : i32
    %c0_i32_1 = arith.constant 0 : i32
    return %c0_i32, %c0_i32_0 : i32, i32
  }
  func.func @transform_2(%arg0: i32) -> (i32, i32) {
    %c0_i32 = arith.constant 0 : i32
    %c0_i32_0 = arith.constant 0 : i32
    %c0_i32_1 = arith.constant 0 : i32
    return %c0_i32, %c0_i32_0 : i32, i32
  }
  func.func @transform_3(%arg0: i32) -> (i32, i32) {
    %c0_i32 = arith.constant 0 : i32
    %c0_i32_0 = arith.constant 0 : i32
    %c0_i32_1 = arith.constant 0 : i32
    return %c0_i32, %c0_i32_0 : i32, i32
  }
  func.func @transform_4(%arg0: i32) -> (i32, i32) {
    %c0_i32 = arith.constant 0 : i32
    %c0_i32_0 = arith.constant 0 : i32
    %c0_i32_1 = arith.constant 0 : i32
    return %c0_i32, %c0_i32_0 : i32, i32
  }
  func.func @transform_5(%arg0: i32) -> (i32, i32) {
    %c0_i32 = arith.constant 0 : i32
    %c0_i32_0 = arith.constant 0 : i32
    return %arg0, %c0_i32 : i32, i32
  }
}

</mosaic_0001>

<bundles_post_ra>
// kernel: ffnn_forward.1
= control target key start
LH: loop header
LB: loop body
LE: loop exit
PB: predicated region body
PF: predicated region fallthrough
CT: control target
= control target key end

     0   :  { %s221_s0 = inlined_call_operand.vmem [shape: f32[8,32], index: 0, kind: input, shape index: {}]   ;;  %s222_s1 = inlined_call_operand.vmem [shape: f32[32,32], index: 1, kind: input, shape index: {}]   ;;  %s223_s2 = inlined_call_operand.vmem [shape: f32[1,32], index: 2, kind: input, shape index: {}]   ;;  %s224_s3 = inlined_call_operand.vmem [shape: f32[32,5], index: 3, kind: input, shape index: {}]   ;;  %s225_s4 = inlined_call_operand.vmem [shape: f32[1,5], index: 4, kind: input, shape index: {}]   ;;  %s226_s5 = inlined_call_operand.hbm [shape: f32[8,5], index: 5, kind: output, shape index: {}]  }
   0x1   :  { %v25_v0 = vld [vmem:[%s222_s1 + $0x18] sm:$0xff]  ;;  %v24_v1 = vld [vmem:[%s222_s1 + $0x10] sm:$0xff]  ;;  %v23_v3 = vld [vmem:[%s222_s1 + $0x8] sm:$0xff] }
   0x2   :  { %46 = vmatpush.msra.mxu0 %v25_v0  ;;  %v58_v2 = vld [vmem:[%s224_s3 + $0x18] sm:$0xff] }
   0x3   :  { %78 = vmatpush.msra.mxu1 %v58_v2 }
   0x4   :  { %47 = vmatpush.msra.mxu0 %v24_v1 }
   0x5   :  { %10 = vsyncpa [#allocation3], 0  ;;  %v22_v4 = vld [vmem:[%s222_s1] sm:$0xff]  ;;  %vm30_vm0 = vcmask 261120   ;;  %v57_v6 = vld [vmem:[%s224_s3 + $0x10] sm:$0xff]  ;;  %vm86_vm1 = vcmask 39936  }
   0x6   :  { %48 = vmatpush.msra.mxu0 %v23_v3  ;;  %v21_v5 = vld [vmem:[%s221_s0] sm:$0xff]  ;;  %79 = vmatpush.msra.mxu1 %v57_v6  ;;  %v56_v7 = vld [vmem:[%s224_s3 + $0x8] sm:$0xff]  ;;  %s107_s14 = sshll.u32 %s226_s5, 4  ;;  %s108_s14 = int_to_ptr.hbm [resolvable:$true] %s107_s14 }
   0x7   :  { %v55_v8 = vld [vmem:[%s224_s3] sm:$0xff] }
   0x8   :  { %49 = vmatpush.msra.mxu0 %v22_v4  ;;  %80 = vmatpush.msra.mxu1 %v56_v7  ;;  %v119_v9 = vld [vmem:[%s223_s2] ss:$0 sm:$0xff]  ;;  %s151_s2 = smov [#allocation2]  }
   0x9   :  { %116 = vmatmul.msk.f32.vlgmr.msra.gmra.mxu0 %vm30_vm0, %v21_v5  ;;  %v120_v13 = vld [vmem:[%s225_s4] ss:$0 sm:$0xff]  ;;  %s105_s3 = sshll.u32 %s151_s2, 4  ;;  %s106_s3 = int_to_ptr.vmem [resolvable:$true] %s105_s3 }
   0xa   :  { %81 = vmatpush.msra.mxu1 %v55_v8 }
  0x86   :  { %v51_v10 = vpop.f32.mrf.mxu0 }
  0x87   :  { %v52_v11 = vadd.f32 %v119_v9, %v51_v10 }
  0x89   :  { %v54_v12 = vmax.f32 %v52_v11, 0.0 }
  0x8b   :  { %117 = vmatmul.msk.f32.vlgmr.msra.gmra.mxu1 %vm30_vm0, %v54_v12 }
 0x108   :  { %v83_v14 = vpop.f32.mrf.mxu1 }
 0x109   :  { %v84_v15 = vadd.f32 %v120_v13, %v83_v14 }
 0x10b   :  { %v87_v16 = vsel %vm86_vm1, %v84_v15, -inf }
 0x10c   :  { %88 = vmax.xlane.f32.xlu0 %v87_v16 }
 0x17f   :  { %v89_v17 = vpop.xlane.xlu0 %88 }
 0x180   :  { %v90_v18 = vsub.f32 %v84_v15, %v89_v17 }
 0x182   :  { %v91_v19 = vmul.f32 1.442695, %v90_v18 }
 0x184   :  { %121 = vpow2.f32 %v91_v19 }
 0x18a   :  { %v122_v20 = vpop.eup %121 }
 0x18b   :  { %v93_v21 = vsel %vm86_vm1, %v122_v20, 0.0 }
 0x18c   :  { %94 = vadd.xlane.f32.xlu0 %v93_v21 }
 0x1ff   :  { %v95_v22 = vpop.xlane.xlu0 %94 }
 0x200   :  { %123 = vlog2.f32 %v95_v22 }
 0x206   :  { %v124_v23 = vpop.eup %123 }
 0x207   :  { %v97_v24 = vmul.f32 0.6931472, %v124_v23 }
 0x209   :  { %v98_v25 = vsub.f32 %v90_v18, %v97_v24 }
 0x20b   :  { %99 = vst.msk [vmem:[#allocation2] sm:$0xff] %vm86_vm1, %v98_v25 }
 0x20c   :  { %110 = dma.vmem_to_hbm [thread:$0]  %s106_s3, 128, %s108_s14, [#allocation3]  }
 0x20d   :  { %149 = dma.done.wait [#allocation3], 128  }
 0x20e   :  { %150 = vsyncadd [#allocation3], 4294967168 }
 0x20f   :  { %115 = vsyncpa [#allocation3], 1 }

</bundles_post_ra>
